<compile_context>
chip_gen: v5e
topology: v5e:2x2
jax: 0.10.0
libtpu: 0.0.40
codegen_flags: <defaults>
</compile_context>

<pallas_src>
import jax
import jax.numpy as jnp
from jax import lax
from jax.experimental import pallas as pl
from jax.experimental.pallas import tpu as pltpu

LANES = 128
CHUNK_ROWS = 128                      # inner-loop slice (multiple of 8/16/32 packs)
MAX_ROW_TILE = 8192                   # upper bound on rows per block
TARGET_BLOCK_BYTES = 2 * 1024 * 1024  # ~2 MiB per input per buffer (4 bufs ~ 8 MiB)


def _round_up(x, m):
    return ((x + m - 1) // m) * m


def _default_num_parallel():
    # Two TensorCores per chip on v7x; one on v5e/v6e.
    try:
        kind = jax.devices()[0].device_kind.lower()
    except Exception:
        return 1
    return 2 if ("v7" in kind or "7x" in kind) else 1


def _make_sumsq_kernel(rows, row_tile, chunk_rows, n_cols, blocks_per_part, inv_total):
    n_chunks = row_tile // chunk_rows
    unroll = min(n_chunks, 8)

    def kernel(x_ref, t_ref, o_ref, acc_ref):
        p = pl.program_id(0)
        i = pl.program_id(1)

        @pl.when(i == 0)
        def _init():
            acc_ref[...] = jnp.zeros_like(acc_ref)

        # Logical (unclamped) block start; the BlockSpec index_map clamps the
        # DMA in-bounds, and the row mask below zeroes any surplus / OOB rows.
        block_start = (p * blocks_per_part + i) * row_tile
        valid_rows = rows - block_start            # traced scalar, may be <= 0

        def chunk_sq(c):
            r0 = pl.multiple_of(c * chunk_rows, chunk_rows)
            xs = x_ref[pl.ds(r0, chunk_rows), :].astype(jnp.float32)
            ts = t_ref[pl.ds(r0, chunk_rows), :].astype(jnp.float32)
            d = xs - ts
            return d * d

        def fold(sq):
            # (chunk_rows, C) -> (chunk_rows//8, 8, C); summing the leading axis
            # is pure vreg adds (VPU), no cross-lane XLU work in the hot loop.
            return jnp.sum(sq.reshape(-1, 8, n_cols), axis=0)

        @pl.when(valid_rows >= row_tile)            # fast path: fully valid block
        def _full_block():
            def body(c, acc):
                return acc + fold(chunk_sq(c))
            acc_ref[...] += lax.fori_loop(0, n_chunks, body,
                                          jnp.zeros((8, n_cols), jnp.float32),
                                          unroll=unroll)

        @pl.when(valid_rows < row_tile)             # ragged last / surplus block
        def _partial_block():
            row_iota = lax.broadcasted_iota(jnp.int32, (chunk_rows, n_cols), 0)

            def body(c, acc):
                keep = row_iota < (valid_rows - c * chunk_rows)
                return acc + fold(jnp.where(keep, chunk_sq(c), 0.0))
            acc_ref[...] += lax.fori_loop(0, n_chunks, body,
                                          jnp.zeros((8, n_cols), jnp.float32),
                                          unroll=unroll)

        @pl.when(i == pl.num_programs(1) - 1)       # finalize once per part
        def _finalize():
            o_ref[...] = jnp.reshape(jnp.sum(acc_ref[...]) * inv_total, (1, 1, 1))

    return kernel


def content_loss(x, target, num_parallel=None):
    """ContentLoss.forward: returns (x, loss) with loss = mean((x - target)**2)."""
    assert x.shape == target.shape, "ContentLoss requires x.shape == target.shape"
    total = int(x.size)
    assert total > 0

    itemsize = jnp.dtype(x.dtype).itemsize
    sub_mult = 8 * max(1, 4 // itemsize)   # sublane packing: 8 f32, 16 bf16, 32 int8

    # Free (bitcast) 2-D view: lane-dense (rows, 128) when possible, otherwise
    # collapse to (rows, last_dim).  No jnp.pad / slice copies in either case.
    if total % LANES == 0:
        n_cols = LANES
    else:
        n_cols = int(x.shape[-1]) if x.ndim > 0 else 1
    rows = total // n_cols
    x2 = x.reshape(rows, n_cols)
    t2 = target.reshape(rows, n_cols)

    # Block sizing: ~2 MiB per input per pipeline buffer.
    c_pad = _round_up(n_cols, LANES)
    if rows >= CHUNK_ROWS:
        chunk_rows = CHUNK_ROWS
        budget_rows = max(
            chunk_rows,
            (TARGET_BLOCK_BYTES // (c_pad * itemsize)) // chunk_rows * chunk_rows)
        row_tile = min(MAX_ROW_TILE, budget_rows, _round_up(rows, chunk_rows))
    else:
        row_tile = _round_up(rows, sub_mult)        # single small block
        chunk_rows = row_tile

    n_blocks = pl.cdiv(rows, row_tile)
    num_parallel = _default_num_parallel() if num_parallel is None else int(num_parallel)
    num_parallel = max(1, min(num_parallel, n_blocks))
    blocks_per_part = pl.cdiv(n_blocks, num_parallel)
    max_block = n_blocks - 1

    def in_index_map(p, i):
        # Clamp so a surplus block (uneven split across parts) keeps its DMA
        # in bounds; the kernel's row mask zeroes its contribution.
        return (jnp.minimum(p * blocks_per_part + i, max_block), 0)

    kernel = _make_sumsq_kernel(rows, row_tile, chunk_rows, n_cols,
                                blocks_per_part, 1.0 / float(total))

    partials = pl.pallas_call(
        kernel,
        out_shape=jax.ShapeDtypeStruct((num_parallel, 1, 1), jnp.float32),
        grid_spec=pltpu.PrefetchScalarGridSpec(
            num_scalar_prefetch=0,
            grid=(num_parallel, blocks_per_part),
            in_specs=[
                pl.BlockSpec((row_tile, n_cols), in_index_map),
                pl.BlockSpec((row_tile, n_cols), in_index_map),
            ],
            out_specs=pl.BlockSpec((1, 1, 1), lambda p, i: (p, 0, 0)),
            scratch_shapes=[pltpu.VMEM((8, n_cols), jnp.float32)],
        ),
        compiler_params=pltpu.CompilerParams(
            dimension_semantics=("parallel", "arbitrary"),
        ),
        cost_estimate=pl.CostEstimate(
            flops=3 * total,
            transcendentals=0,
            bytes_accessed=2 * total * itemsize + num_parallel * 4,
        ),
    )(x2, t2)

    loss = jnp.sum(partials)   # <= 2 scalars; 1/N already folded in-kernel
    # forward() returns x unchanged (identity pass-through); loss is the side value.
    return x, loss


if __name__ == "__main__":
    key = jax.random.PRNGKey(0)
    kx, kt = jax.random.split(key)

    # NCHW, as a VGG feature map would be in the style-transfer module.
    shape = (2, 4, 16, 16)
    x = jax.random.normal(kx, shape, dtype=jnp.float32)
    target = jax.random.normal(kt, shape, dtype=jnp.float32)

    y, loss = content_loss(x, target)
    jax.block_until_ready((y, loss))

    # Correctness check against plain-JAX reference (F.mse_loss default 'mean').
    ref_loss = jnp.mean((x - target) ** 2)
    assert jnp.allclose(loss, ref_loss, rtol=1e-6, atol=1e-6), (loss, ref_loss)
    assert jnp.array_equal(y, x)  # forward returns x untouched

    # Exercise the no-pad ragged path (total not divisible by 128, rows ragged).
    k2x, k2t = jax.random.split(kt)
    shape2 = (1, 3, 37, 41)
    x2 = jax.random.normal(k2x, shape2, dtype=jnp.float32)
    t2 = jax.random.normal(k2t, shape2, dtype=jnp.float32)
    y2, loss2 = content_loss(x2, t2)
    jax.block_until_ready((y2, loss2))
    ref2 = jnp.mean((x2 - t2) ** 2)
    assert jnp.allclose(loss2, ref2, rtol=1e-6, atol=1e-6), (loss2, ref2)
    assert jnp.array_equal(y2, x2)

    print("KERNEL_OK")
</pallas_src>

<mosaic_0001>
module attributes {stable_mosaic.version = 11 : i64} {
  func.func @kernel(%arg0: i32, %arg1: i32, %arg2: memref<16x128xf32, #tpu.memory_space<vmem>>, %arg3: memref<16x128xf32, #tpu.memory_space<vmem>>, %arg4: memref<1x1x1xf32, #tpu.memory_space<vmem>>, %arg5: memref<8x128xf32, #tpu.memory_space<vmem>>) attributes {dimension_semantics = [#tpu.dimension_semantics<parallel>, #tpu.dimension_semantics<arbitrary>], iteration_bounds = array<i64: 1, 1>, scalar_prefetch = 0 : i64, scratch_operands = 1 : i64, tpu.core_type = #tpu.core_type<tc>, window_params = [{transform_indices = @transform_0, window_bounds = array<i64: 16, 128>}, {transform_indices = @transform_1, window_bounds = array<i64: 16, 128>}, {transform_indices = @transform_2, window_bounds = array<i64: 1, 1, 1>}]} {
    %c0_i32 = arith.constant 0 : i32
    %0 = arith.cmpi eq, %arg1, %c0_i32 : i32
    %1 = arith.extui %0 : i1 to i32
    %c0_i32_0 = arith.constant 0 : i32
    %2 = arith.cmpi ne, %1, %c0_i32_0 : i32
    scf.if %2 {
      %cst = arith.constant 0.000000e+00 : f32
      %16 = vector.broadcast %cst : f32 to vector<8x128xf32>
      %c0 = arith.constant 0 : index
      %c0_8 = arith.constant 0 : index
      %17 = vector.load %arg5[%c0, %c0_8] : memref<8x128xf32, #tpu.memory_space<vmem>>, vector<8x128xf32>
      tpu.vector_store %arg5[%c0, %c0_8], %16 {strides = array<i32>} : memref<8x128xf32, #tpu.memory_space<vmem>>, vector<8x128xf32>,
    } else {
    }
    %c1_i32 = arith.constant 1 : i32
    %3 = arith.muli %arg0, %c1_i32 : i32
    %4 = arith.addi %3, %arg1 : i32
    %c16_i32 = arith.constant 16 : i32
    %5 = arith.muli %4, %c16_i32 : i32
    %c16_i32_1 = arith.constant 16 : i32
    %6 = arith.subi %c16_i32_1, %5 : i32
    %c16_i32_2 = arith.constant 16 : i32
    %7 = arith.cmpi sge, %6, %c16_i32_2 : i32
    %8 = arith.extui %7 : i1 to i32
    %c0_i32_3 = arith.constant 0 : i32
    %9 = arith.cmpi ne, %8, %c0_i32_3 : i32
    scf.if %9 {
      %c0 = arith.constant 0 : index
      %c0_8 = arith.constant 0 : index
      %16 = vector.load %arg5[%c0, %c0_8] : memref<8x128xf32, #tpu.memory_space<vmem>>, vector<8x128xf32>
      %cst = arith.constant 0.000000e+00 : f32
      %17 = vector.broadcast %cst : f32 to vector<8x128xf32>
      %c0_i32_9 = arith.constant 0 : i32
      %c16_i32_10 = arith.constant 16 : i32
      %18 = arith.muli %c0_i32_9, %c16_i32_10 : i32
      %19 = tpu.assume_multiple %18, 16 : i32
      %20 = arith.index_cast %19 : i32 to index
      %c0_11 = arith.constant 0 : index
      %21 = vector.load %arg2[%20, %c0_11] : memref<16x128xf32, #tpu.memory_space<vmem>>, vector<16x128xf32>
      %22 = arith.index_cast %19 : i32 to index
      %c0_12 = arith.constant 0 : index
      %23 = vector.load %arg3[%22, %c0_12] : memref<16x128xf32, #tpu.memory_space<vmem>>, vector<16x128xf32>
      %24 = arith.subf %21, %23 : vector<16x128xf32>
      %25 = arith.mulf %24, %24 : vector<16x128xf32>
      %26 = vector.shape_cast %25 : vector<16x128xf32> to vector<2x8x128xf32>
      %cst_13 = arith.constant dense<0.000000e+00> : vector<8x128xf32>
      %27 = vector.multi_reduction <add>, %26, %cst_13 [0] : vector<2x8x128xf32> to vector<8x128xf32>
      %28 = arith.addf %17, %27 : vector<8x128xf32>
      %c1_i32_14 = arith.constant 1 : i32
      %29 = arith.addf %16, %28 : vector<8x128xf32>
      %c0_15 = arith.constant 0 : index
      %c0_16 = arith.constant 0 : index
      %30 = vector.load %arg5[%c0_15, %c0_16] : memref<8x128xf32, #tpu.memory_space<vmem>>, vector<8x128xf32>
      tpu.vector_store %arg5[%c0_15, %c0_16], %29 {strides = array<i32>} : memref<8x128xf32, #tpu.memory_space<vmem>>, vector<8x128xf32>,
    } else {
    }
    %c16_i32_4 = arith.constant 16 : i32
    %10 = arith.cmpi slt, %6, %c16_i32_4 : i32
    %11 = arith.extui %10 : i1 to i32
    %c0_i32_5 = arith.constant 0 : i32
    %12 = arith.cmpi ne, %11, %c0_i32_5 : i32
    scf.if %12 {
      %16 = tpu.iota {dimensions = array<i32: 0>} : vector<16x128xi32>
      %c0 = arith.constant 0 : index
      %c0_8 = arith.constant 0 : index
      %17 = vector.load %arg5[%c0, %c0_8] : memref<8x128xf32, #tpu.memory_space<vmem>>, vector<8x128xf32>
      %cst = arith.constant 0.000000e+00 : f32
      %18 = vector.broadcast %cst : f32 to vector<8x128xf32>
      %c0_i32_9 = arith.constant 0 : i32
      %c16_i32_10 = arith.constant 16 : i32
      %19 = arith.muli %c0_i32_9, %c16_i32_10 : i32
      %20 = arith.subi %6, %19 : i32
      %21 = vector.broadcast %20 : i32 to vector<16x128xi32>
      %22 = arith.cmpi slt, %16, %21 : vector<16x128xi32>
      %c16_i32_11 = arith.constant 16 : i32
      %23 = arith.muli %c0_i32_9, %c16_i32_11 : i32
      %24 = tpu.assume_multiple %23, 16 : i32
      %25 = arith.index_cast %24 : i32 to index
      %c0_12 = arith.constant 0 : index
      %26 = vector.load %arg2[%25, %c0_12] : memref<16x128xf32, #tpu.memory_space<vmem>>, vector<16x128xf32>
      %27 = arith.index_cast %24 : i32 to index
      %c0_13 = arith.constant 0 : index
      %28 = vector.load %arg3[%27, %c0_13] : memref<16x128xf32, #tpu.memory_space<vmem>>, vector<16x128xf32>
      %29 = arith.subf %26, %28 : vector<16x128xf32>
      %30 = arith.mulf %29, %29 : vector<16x128xf32>
      %cst_14 = arith.constant 0.000000e+00 : f32
      %31 = vector.broadcast %cst_14 : f32 to vector<16x128xf32>
      %32 = arith.select %22, %30, %31 : vector<16x128xi1>, vector<16x128xf32>
      %33 = vector.shape_cast %32 : vector<16x128xf32> to vector<2x8x128xf32>
      %cst_15 = arith.constant dense<0.000000e+00> : vector<8x128xf32>
      %34 = vector.multi_reduction <add>, %33, %cst_15 [0] : vector<2x8x128xf32> to vector<8x128xf32>
      %35 = arith.addf %18, %34 : vector<8x128xf32>
      %c1_i32_16 = arith.constant 1 : i32
      %36 = arith.addf %17, %35 : vector<8x128xf32>
      %c0_17 = arith.constant 0 : index
      %c0_18 = arith.constant 0 : index
      %37 = vector.load %arg5[%c0_17, %c0_18] : memref<8x128xf32, #tpu.memory_space<vmem>>, vector<8x128xf32>
      tpu.vector_store %arg5[%c0_17, %c0_18], %36 {strides = array<i32>} : memref<8x128xf32, #tpu.memory_space<vmem>>, vector<8x128xf32>,
    } else {
    }
    %c0_i32_6 = arith.constant 0 : i32
    %13 = arith.cmpi eq, %arg1, %c0_i32_6 : i32
    %14 = arith.extui %13 : i1 to i32
    %c0_i32_7 = arith.constant 0 : i32
    %15 = arith.cmpi ne, %14, %c0_i32_7 : i32
    scf.if %15 {
      %c0 = arith.constant 0 : index
      %c0_8 = arith.constant 0 : index
      %16 = vector.load %arg5[%c0, %c0_8] : memref<8x128xf32, #tpu.memory_space<vmem>>, vector<8x128xf32>
      %17 = vector.shape_cast %16 : vector<8x128xf32> to vector<1x8x128xf32>
      %cst = arith.constant dense<0.000000e+00> : vector<1xf32>
      %18 = vector.multi_reduction <add>, %17, %cst [1, 2] : vector<1x8x128xf32> to vector<1xf32>
      %19 = vector.shape_cast %18 : vector<1xf32> to vector<1x1x1xf32>
      %20 = vector.extract %19[0, 0, 0] : f32 from vector<1x1x1xf32>
      %cst_9 = arith.constant 4.8828125E-4 : f32
      %21 = arith.mulf %20, %cst_9 : f32
      %22 = vector.broadcast %21 : f32 to vector<1x1x1xf32>
      %c0_10 = arith.constant 0 : index
      %c0_11 = arith.constant 0 : index
      %c0_12 = arith.constant 0 : index
      %23 = vector.load %arg4[%c0_10, %c0_11, %c0_12] : memref<1x1x1xf32, #tpu.memory_space<vmem>>, vector<1x1x1xf32>
      tpu.vector_store %arg4[%c0_10, %c0_11, %c0_12], %22 {strides = array<i32>} : memref<1x1x1xf32, #tpu.memory_space<vmem>>, vector<1x1x1xf32>,
    } else {
    }
    return
  }
  func.func @transform_0(%arg0: i32, %arg1: i32) -> (i32, i32) {
    %c1_i32 = arith.constant 1 : i32
    %0 = arith.muli %arg0, %c1_i32 : i32
    %1 = arith.addi %0, %arg1 : i32
    %c0_i32 = arith.constant 0 : i32
    %2 = arith.minsi %1, %c0_i32 : i32
    %c0_i32_0 = arith.constant 0 : i32
    %c0_i32_1 = arith.constant 0 : i32
    return %2, %c0_i32_0 : i32, i32
  }
  func.func @transform_1(%arg0: i32, %arg1: i32) -> (i32, i32) {
    %c1_i32 = arith.constant 1 : i32
    %0 = arith.muli %arg0, %c1_i32 : i32
    %1 = arith.addi %0, %arg1 : i32
    %c0_i32 = arith.constant 0 : i32
    %2 = arith.minsi %1, %c0_i32 : i32
    %c0_i32_0 = arith.constant 0 : i32
    %c0_i32_1 = arith.constant 0 : i32
    return %2, %c0_i32_0 : i32, i32
  }
  func.func @transform_2(%arg0: i32, %arg1: i32) -> (i32, i32, i32) {
    %c0_i32 = arith.constant 0 : i32
    %c0_i32_0 = arith.constant 0 : i32
    %c0_i32_1 = arith.constant 0 : i32
    return %arg0, %c0_i32, %c0_i32_0 : i32, i32, i32
  }
}

</mosaic_0001>

<bundles_post_ra>
// kernel: tpu_custom_call.1
= control target key start
LH: loop header
LB: loop body
LE: loop exit
PB: predicated region body
PF: predicated region fallthrough
CT: control target
= control target key end

     0   :  { %7 = vsyncpa [#allocation4], 0  ;;  %s267_s0 = inlined_call_operand.hbm [shape: f32[16,128], index: 0, kind: input, shape index: {}]   ;;  %s268_s1 = inlined_call_operand.hbm [shape: f32[16,128], index: 1, kind: input, shape index: {}]   ;;  %s269_s2 = inlined_call_operand.hbm [shape: f32[1,1,1], index: 2, kind: output, shape index: {}]  }
   0x1   :  { %8 = vsyncpa [#allocation7], 0 }
   0x2   :  { %9 = vsyncpa [#allocation5], 0  ;;  %s20_s11 = sshll.u32 %s267_s0, 4  ;;  %s238_s12 = smov [#allocation3]   ;;  %s21_s11 = int_to_ptr.hbm [resolvable:$true] %s20_s11 }
   0x3   :  { %s22_s13 = sshll.u32 %s238_s12, 4  ;;  %s39_s16 = sshll.u32 %s268_s1, 4  ;;  %s23_s13 = int_to_ptr.vmem [resolvable:$true] %s22_s13  ;;  %s40_s16 = int_to_ptr.hbm [resolvable:$true] %s39_s16 }
   0x4   :  { %s239_s17 = smov 128   ;;  %s240_s18 = smov 8  }
   0x5   :  { %28 = dma.hbm_to_vmem [thread:$0]  %s21_s11, 256, %s23_s13, [#allocation4], %s239_s17, %s239_s17, %s240_s18  }
   0x6   :  { %s241_s19 = smov [#allocation6]  }
   0x7   :  { %s41_s20 = sshll.u32 %s241_s19, 4  ;;  %s42_s20 = int_to_ptr.vmem [resolvable:$true] %s41_s20 }
   0x8   :  { %47 = dma.hbm_to_vmem [thread:$0]  %s40_s16, 256, %s42_s20, [#allocation7], %s239_s17, %s239_s17, %s240_s18  }
   0x9   :  { %232 = dma.done.wait [#allocation4], 256  }
   0xa   :  { %233 = vsyncadd [#allocation4], 4294967040 }
   0xb   :  { %234 = dma.done.wait [#allocation7], 256  }
   0xc   :  { %235 = vsyncadd [#allocation7], 4294967040  ;;  %v77_v0 = vld [vmem:[#allocation3] sm:$0xff]  ;;  %v78_v1 = vld [vmem:[#allocation3 + $0x8] sm:$0xff]  ;;  %s242_s0 = smov [#allocation8]   ;;  %s138_s23 = sshll.u32 %s269_s2, 4  ;;  %s139_s23 = int_to_ptr.hbm [resolvable:$true] %s138_s23 }
   0xd   :  { %v79_v2 = vld [vmem:[#allocation6] sm:$0xff]  ;;  %v80_v3 = vld [vmem:[#allocation6 + $0x8] sm:$0xff]  ;;  %s136_s1 = sshll.u32 %s242_s0, 4  ;;  %vm129_vm0 = vcmask 0   ;;  %s137_s1 = int_to_ptr.vmem [resolvable:$true] %s136_s1 }
   0xe   :  { %v81_v4 = vsub.f32 %v77_v0, %v79_v2  ;;  %v82_v5 = vsub.f32 %v78_v1, %v80_v3 }
  0x10   :  { %v83_v6 = vmul.f32 %v81_v4, %v81_v4  ;;  %v84_v7 = vmul.f32 %v82_v5, %v82_v5 }
  0x12   :  { %v85_v8 = vadd.f32 %v84_v7, %v83_v6 }
  0x14   :  { %118 = vadd.xlane.f32.xlu0 %v85_v8 }
  0x87   :  { %v119_v9 = vpop.xlane.xlu0 %118 }
  0x88   :  { %v120_v10 = vrot.slane %v119_v9, 4 }
  0x8a   :  { %v121_v11 = vadd.f32 %v120_v10, %v119_v9 }
  0x8c   :  { %v122_v12 = vrot.slane %v121_v11, 2 }
  0x8e   :  { %v123_v13 = vadd.f32 %v122_v12, %v121_v11 }
  0x90   :  { %v124_v14 = vrot.slane %v123_v13, 1 }
  0x92   :  { %v125_v15 = vadd.f32 %v124_v14, %v123_v13 }
  0x94   :  { %153 = vpush %v125_v15 }
  0xc5   :  { %s154_s24 = spop %153 }
  0xc6   :  { %s127_s25 = smul.f32 0.00048828125, %s154_s24 }
  0xc8   :  { %v128_v16 = vstv %s127_s25 }
  0xc9   :  { %130 = vst.msk [vmem:[#allocation8] sm:$0x1] %vm129_vm0, %v128_v16 }
  0xca   :  { %141 = dma.vmem_to_hbm [thread:$0]  %s137_s1, 16, %s139_s23, [#allocation5]  }
  0xcb   :  { %236 = dma.done.wait [#allocation5], 16  }
  0xcc   :  { %237 = vsyncadd [#allocation5], 4294967280 }
  0xcd   :  { %146 = vsyncpa [#allocation4], 1 }
  0xce   :  { %147 = vsyncpa [#allocation7], 1 }
  0xcf   :  { %148 = vsyncpa [#allocation5], 1 }

</bundles_post_ra>
